<compile_context>
chip_gen: v6e
topology: v6e:2x2x1
jax: 0.10.0
libtpu: 0.0.40
codegen_flags: <defaults>
</compile_context>

<pallas_src>
import jax
import jax.numpy as jnp
import numpy as np
from jax.experimental import pallas as pl
from jax.experimental.pallas import tpu as pltpu


def _attention_kernel(xin_ref, uenc_ref, out_ref):
    """One batch element per grid step.

    xin_ref : (H, S_in)     encoder states for batch b (sublane=H, lane=S_in)
    uenc_ref: (H, 1)        folded encoder projection column u_enc = W_enc^T v
    out_ref : (S_tgt, S_in) attention for batch b (all S_tgt rows identical)
    """
    s_tgt, s_in = out_ref.shape

    # Encoder scores: VPU broadcast-multiply + cross-sublane reduce over H.
    # (No MXU: a (1,H)x(H,S) mat-vec would pad to a full MXU pass at <1% util.)
    scores = jnp.sum(xin_ref[...] * uenc_ref[...], axis=0, keepdims=True)  # (1, S_in)

    # Max-stabilized softmax over S_in (lane axis).  The decoder term and all
    # linear biases are constant along S_in, so they cancel and are omitted.
    scores = scores - jnp.max(scores, axis=-1, keepdims=True)
    p = jnp.exp(scores)
    inv_den = pl.reciprocal(jnp.sum(p, axis=-1, keepdims=True), approx=True)
    row = (p * inv_den).astype(out_ref.dtype)                              # (1, S_in)

    # attn[b, t, :] is identical for every t -> one sublane-broadcast store.
    out_ref[...] = jnp.broadcast_to(row, (s_tgt, s_in))


@jax.jit
def bahdanau_attention(input_encode, target_encode, params):
    """input_encode: (S_in, B, H), target_encode: (S_tgt, B, H) (PyTorch layout).

    Returns attn: (B, S_tgt, S_in), softmax over the last (S_in) axis, matching
    Attention(attn_type='Bahdanau').forward(input_encode, target_encode, mask=None).
    """
    w_enc, b_enc, w_dec, b_dec, w_v, b_v = params
    # Decoder weights/biases and all bias terms are constant along the softmax
    # axis -> they cancel inside the softmax and never reach the kernel.
    del w_dec, b_dec, b_enc, b_v
    S_in, B, H = input_encode.shape
    S_tgt = target_encode.shape[0]     # target only sets the broadcast extent

    # Fold enc_linear into vect_linear: u_enc = W_enc^T v  (tiny XLA mat-vec,
    # done once in the wrapper, valid because there is no tanh in this module).
    v = w_v.reshape(H).astype(jnp.float32)
    u_enc = (w_enc.T @ v).reshape(H, 1)                                   # (H, 1)

    # Batch-major, H-on-sublane / S_in-on-lane layout for the kernel.
    xin_bhs = jnp.transpose(input_encode, (1, 2, 0)).astype(jnp.float32)  # (B, H, S_in)

    # TODO(synk): at production sizes, tile S_tgt / S_in (multiples of 8 / 128)
    # via BlockSpec for pipelining + lane-dense unmasked stores, and consider
    # bf16 operands on v6e/v7x; whole-(S_tgt,S_in) blocks are fine at toy sizes.
    return pl.pallas_call(
        _attention_kernel,
        out_shape=jax.ShapeDtypeStruct((B, S_tgt, S_in), jnp.float32),
        grid=(B,),
        in_specs=[
            pl.BlockSpec((None, H, S_in), lambda b: (b, 0, 0)),   # per-batch (H, S_in)
            pl.BlockSpec((H, 1), lambda b: (0, 0)),               # shared u_enc
        ],
        out_specs=pl.BlockSpec((None, S_tgt, S_in), lambda b: (b, 0, 0)),
        compiler_params=pltpu.CompilerParams(
            dimension_semantics=("parallel",)),    # v7x: shard batches across TCs
    )(xin_bhs, u_enc)


def _reference(input_encode, target_encode, params):
    """Pure-JAX replica of the PyTorch forward (Bahdanau) for verification."""
    w_enc, b_enc, w_dec, b_dec, w_v, b_v = params
    ie = jnp.transpose(input_encode, (1, 0, 2)) @ w_enc.T + b_enc      # (B, S_in, H)
    ie = ie[:, :, None, :]                                             # (B, S_in, 1, H)
    te = jnp.transpose(target_encode, (1, 0, 2)) @ w_dec.T + b_dec     # (B, S_tgt, H)
    te = te[:, None, :, :]                                             # (B, 1, S_tgt, H)
    m = te + ie                                                        # (B, S_in, S_tgt, H)
    m = m @ w_v.reshape(-1, 1) + b_v                                   # (B, S_in, S_tgt, 1)
    m = jnp.transpose(m[..., 0], (0, 2, 1))                            # (B, S_tgt, S_in)
    return jax.nn.softmax(m, axis=2)


def _init_params(key, hidden_size):
    """Deterministic init matching nn.Linear shapes (U(-1/sqrt(in), 1/sqrt(in)))."""
    ks = jax.random.split(key, 6)
    H = hidden_size
    bound = 1.0 / np.sqrt(H)
    w_enc = jax.random.uniform(ks[0], (H, H), jnp.float32, -bound, bound)
    b_enc = jax.random.uniform(ks[1], (H,), jnp.float32, -bound, bound)
    w_dec = jax.random.uniform(ks[2], (H, H), jnp.float32, -bound, bound)
    b_dec = jax.random.uniform(ks[3], (H,), jnp.float32, -bound, bound)
    w_v = jax.random.uniform(ks[4], (1, H), jnp.float32, -bound, bound)
    b_v = jax.random.uniform(ks[5], (1,), jnp.float32, -bound, bound)
    return (w_enc, b_enc, w_dec, b_dec, w_v, b_v)


if __name__ == "__main__":
    key = jax.random.PRNGKey(0)
    H = 32          # hidden_size
    B = 2           # batch
    S_IN = 16       # encoder sequence length
    S_TGT = 8       # decoder sequence length

    k_in, k_tgt, k_par = jax.random.split(key, 3)
    # PyTorch sequence-first layout: (seq, batch, hidden)
    input_encode = jax.random.normal(k_in, (S_IN, B, H), jnp.float32)
    target_encode = jax.random.normal(k_tgt, (S_TGT, B, H), jnp.float32)
    params = _init_params(k_par, H)

    attn = bahdanau_attention(input_encode, target_encode, params)
    attn = jax.block_until_ready(attn)

    ref = _reference(input_encode, target_encode, params)
    assert attn.shape == (B, S_TGT, S_IN)
    # Tolerance accounts for the EUP approximate reciprocal in the softmax
    # normalization (attention weights are <= 1).
    np.testing.assert_allclose(np.asarray(attn), np.asarray(ref),
                               rtol=1e-3, atol=1e-3)

    print("KERNEL_OK")
</pallas_src>

<mosaic_0001>
module attributes {stable_mosaic.version = 11 : i64} {
  func.func @_attention_kernel(%arg0: i32, %arg1: memref<1x32x16xf32, #tpu.memory_space<vmem>>, %arg2: memref<32x1xf32, #tpu.memory_space<vmem>>, %arg3: memref<1x8x16xf32, #tpu.memory_space<vmem>>) attributes {dimension_semantics = [#tpu.dimension_semantics<parallel>], iteration_bounds = array<i64: 2>, scalar_prefetch = 0 : i64, scratch_operands = 0 : i64, tpu.core_type = #tpu.core_type<tc>, window_params = [{transform_indices = @transform_0, window_bounds = array<i64: 1, 32, 16>}, {pipeline_mode = #tpu.pipeline_mode<synchronous>, transform_indices = @transform_1, window_bounds = array<i64: 32, 1>}, {transform_indices = @transform_2, window_bounds = array<i64: 1, 8, 16>}]} {
    %c0 = arith.constant 0 : index
    %c0_0 = arith.constant 0 : index
    %c0_1 = arith.constant 0 : index
    %0 = vector.load %arg1[%c0, %c0_0, %c0_1] : memref<1x32x16xf32, #tpu.memory_space<vmem>>, vector<1x32x16xf32>
    %1 = vector.shape_cast %0 : vector<1x32x16xf32> to vector<32x16xf32>
    %c0_2 = arith.constant 0 : index
    %c0_3 = arith.constant 0 : index
    %2 = vector.load %arg2[%c0_2, %c0_3] : memref<32x1xf32, #tpu.memory_space<vmem>>, vector<32x1xf32>
    %3 = vector.broadcast %2 : vector<32x1xf32> to vector<32x16xf32>
    %4 = arith.mulf %1, %3 : vector<32x16xf32>
    %cst = arith.constant dense<0.000000e+00> : vector<16xf32>
    %5 = vector.multi_reduction <add>, %4, %cst [0] : vector<32x16xf32> to vector<16xf32>
    %6 = vector.shape_cast %5 : vector<16xf32> to vector<1x16xf32>
    %cst_4 = arith.constant dense<0xFF800000> : vector<1xf32>
    %7 = vector.multi_reduction <maximumf>, %6, %cst_4 [1] : vector<1x16xf32> to vector<1xf32>
    %8 = vector.shape_cast %7 : vector<1xf32> to vector<1x1xf32>
    %9 = vector.broadcast %8 : vector<1x1xf32> to vector<1x16xf32>
    %10 = arith.subf %6, %9 : vector<1x16xf32>
    %11 = math.exp %10 : vector<1x16xf32>
    %cst_5 = arith.constant dense<0.000000e+00> : vector<1xf32>
    %12 = vector.multi_reduction <add>, %11, %cst_5 [1] : vector<1x16xf32> to vector<1xf32>
    %13 = vector.shape_cast %12 : vector<1xf32> to vector<1x1xf32>
    %14 = tpu.reciprocal %13 {approx = true} : vector<1x1xf32> -> vector<1x1xf32>
    %15 = vector.broadcast %14 : vector<1x1xf32> to vector<1x16xf32>
    %16 = arith.mulf %11, %15 : vector<1x16xf32>
    %17 = vector.shape_cast %16 : vector<1x16xf32> to vector<1x16xf32>
    %18 = vector.broadcast %17 : vector<1x16xf32> to vector<8x16xf32>
    %c0_6 = arith.constant 0 : index
    %c0_7 = arith.constant 0 : index
    %c0_8 = arith.constant 0 : index
    %19 = vector.load %arg3[%c0_6, %c0_7, %c0_8] : memref<1x8x16xf32, #tpu.memory_space<vmem>>, vector<1x8x16xf32>
    %20 = vector.shape_cast %19 : vector<1x8x16xf32> to vector<8x16xf32>
    %21 = vector.shape_cast %18 : vector<8x16xf32> to vector<1x8x16xf32>
    tpu.vector_store %arg3[%c0_6, %c0_7, %c0_8], %21 {strides = array<i32>} : memref<1x8x16xf32, #tpu.memory_space<vmem>>, vector<1x8x16xf32>,
    return
  }
  func.func @transform_0(%arg0: i32) -> (i32, i32, i32) {
    %c0_i32 = arith.constant 0 : i32
    %c0_i32_0 = arith.constant 0 : i32
    %c0_i32_1 = arith.constant 0 : i32
    return %arg0, %c0_i32, %c0_i32_0 : i32, i32, i32
  }
  func.func @transform_1(%arg0: i32) -> (i32, i32) {
    %c0_i32 = arith.constant 0 : i32
    %c0_i32_0 = arith.constant 0 : i32
    %c0_i32_1 = arith.constant 0 : i32
    return %c0_i32, %c0_i32_0 : i32, i32
  }
  func.func @transform_2(%arg0: i32) -> (i32, i32, i32) {
    %c0_i32 = arith.constant 0 : i32
    %c0_i32_0 = arith.constant 0 : i32
    %c0_i32_1 = arith.constant 0 : i32
    return %arg0, %c0_i32, %c0_i32_0 : i32, i32, i32
  }
}

</mosaic_0001>

<bundles_post_ra>
// kernel: bahdanau_attention.1
= control target key start
LH: loop header
LB: loop body
LE: loop exit
PB: predicated region body
PF: predicated region fallthrough
CT: control target
= control target key end

     0   :  { %7 = vsyncpa [#allocation3], 0  ;;  %s516_s0 = inlined_call_operand.vmem [shape: f32[2,32,16], index: 0, kind: input, shape index: {}]   ;;  %s517_s1 = inlined_call_operand.vmem [shape: f32[32,1], index: 1, kind: input, shape index: {}]   ;;  %s518_s2 = inlined_call_operand.hbm [shape: f32[2,8,16], index: 2, kind: output, shape index: {}]  }
   0x1   :  { %9 = vsyncpa [#allocation3 + $0x1], 0  ;;  %s410_s9 = smov 0   ;;  %s412_s10 = smov 0  }
   0x2   :  { %s414_s11 = smov 0   ;;  %s416_s12 = smov 0  }
   0x3 LB: > { %s431_s13 = sadd.s32 4294967295, %s391_s12   ;;  %s273_s14 = sadd.s32 4294967294, %s391_s12   ;;  %s391_s12 = sphi %s416_s12, %s524_s12   ;;  %s387_s11 = sphi %s414_s11, %s523_s11   ;;  %s383_s10 = sphi %s412_s10, %s522_s10   ;;  %s379_s9 = sphi %s410_s9, %s521_s9  }
   0x4   : > { %s435_s15 = sadd.s32 1, %s391_s12   ;;  %s69_s16 = sadd.s32 1, %s387_s11 }
   0x5   : > { %s66_s17 = ssub.s32 %s391_s12, %s435_s15  ;;  %p79_p0 = scmp.ne.s32.totalorder %s387_s11, %s383_s10 }
   0x6   : > { %p67_p1 = scmp.eq.s32.totalorder %s66_s17, 0  ;;  %p80_p2 = scmp.eq.s32.totalorder %s431_s13, 1 }
   0x7   : > { %p85_p3 = scmp.ne.s32.totalorder %s383_s10, %s379_s9  ;;  %p86_p4 = scmp.eq.s32.totalorder %s273_s14, 1 }
   0x8   : > { %s446_s18 = scalar_select %p67_p1, %s387_s11, %s69_s16  }
   0x9   : > { %p448_p5 = por %p80_p2, %p79_p0  ;;  %p452_p6 = por %p86_p4, %p85_p3 }
   0xa   : > { %p276_p7 = scmp.ge.s32.totalorder %s391_s12, 1  ;;  %p115_p8 = scmp.lt.s32.totalorder %s391_s12, 3 }
   0xc   : > { %p116_p9 = pnand %p276_p7, %p115_p8 }
   0xd   : > { %p137_p10 = scmp.lt.s32.totalorder (!%p116_p9), %s431_s13, 1  ;;  %s134_s6 = sand.u32 (!%p116_p9), 1, %s383_s10  }
   0xe   : > { %119 = sbr.rel (%p116_p9) target bundleno = 495 (0x1ef), region = 28  ;;  %s277_s7 = sshll.u32 (!%p116_p9), %s134_s6, 3 }
   0xf   : > { %s281_s8 = sshll.u32 (!%p116_p9), %s431_s13, 7  ;;  %s136_s14 = scalar_lea.vmem (!%p116_p9), [#allocation2], %s277_s7 }
  0x10   : > { %s214_s16 = sshll.u32 (!%p116_p9), %s136_s14, 4  ;;  %s212_s22 = scalar_lea.hbm (!%p116_p9), %s518_s2, %s281_s8  ;;  %s215_s16 = int_to_ptr.vmem [resolvable:$true] %s214_s16 }
  0x11   : > { %s201_s23 = scalar_lea.sflag (!%p116_p9), [#allocation3], %s134_s6  ;;  %s331_s24 = scalar_lea.vmem (!%p116_p9), %s215_s16, 128 }
  0x12   : > { %p332_p11 = scmp.ne.s32.totalorder (!%p116_p9), %s215_s16, %s331_s24  ;;  %s394_s25 = smov (!%p116_p9), [#allocation2]  }
  0x13   : > { %v148_v0 = vld [vmem:[%s517_s1 + $0x10] sm:$0xff]  ;;  %v146_v1 = vld [vmem:[%s517_s1] sm:$0xff]  ;;  %v393_v2 = vmov 0   ;;  %v149_v3 = vld [vmem:[%s517_s1 + $0x18] sm:$0xff]  ;;  %s138_s29 = scalar_select %p137_p10, %s431_s13, 1  ;;  %vm174_vm0 = vcmask 130048  }
  0x14   : > { %326 = vset.pattern.permute.xlu1 %v393_v2  ;;  %325 = vset.pattern.permute.xlu0 %v393_v2  ;;  %v147_v4 = vld [vmem:[%s517_s1 + $0x8] sm:$0xff]  ;;  %p333_p12 = pnand %p332_p11, %p448_p5  ;;  %s335_s26 = sshll.u32 %s394_s25, 4  ;;  %s336_s26 = int_to_ptr.vmem [resolvable:$false] %s335_s26 }
  0x15   : > { %162 = vperm.xlu1 %326, %v148_v0   ;;  %152 = vperm.xlu0 %325, %v146_v1   ;;  %s284_s30 = sshll.u32 %s138_s29, 5  ;;  %s337_s13 = scalar_lea.vmem %s336_s26, 256 }
  0x16   : > { %s141_s5 = scalar_lea.vmem %s516_s0, %s284_s30  ;;  %p334_p13 = pneg %p333_p12 }
  0x17   : > { %v142_v7 = vld [vmem:[%s141_s5] sm:$0xff]  ;;  %v144_v8 = vld [vmem:[%s141_s5 + $0x10] sm:$0xff]  ;;  %v143_v9 = vld [vmem:[%s141_s5 + $0x8] sm:$0xff]  ;;  %p338_p0 = scmp.lt.s32.totalorder %s215_s16, %s336_s26  ;;  %p339_p1 = scmp.lt.s32.totalorder %s337_s13, %s331_s24 }
  0x18   : > { %v145_v12 = vld [vmem:[%s141_s5 + $0x18] sm:$0xff] }
  0x19   : > { %167 = vperm.xlu1 %326, %v149_v3   ;;  %157 = vperm.xlu0 %325, %v147_v4   ;;  %p340_p2 = por %p339_p1, %p338_p0 }
  0x1b   : > { %p341_p3 = pnand %p340_p2, %p334_p13 }
  0x90   : > { %v163_v5 = vpop.permute.xlu1 %162  ;;  %v153_v6 = vpop.permute.xlu0 %152 }
  0x91   : > { %v170_v10 = vmul.f32 %v153_v6, %v142_v7  ;;  %v172_v14 = vmul.f32 %v163_v5, %v144_v8 }
  0x93   : > { %v175_v16 = vsel %vm174_vm0, %v170_v10, 0.0  ;;  %v178_v20 = vsel %vm174_vm0, %v172_v14, 0.0 }
  0x94   : > { %v168_v11 = vpop.permute.xlu1 %167  ;;  %v158_v13 = vpop.permute.xlu0 %157 }
  0x95   : > { %v171_v15 = vmul.f32 %v158_v13, %v143_v9  ;;  %v173_v17 = vmul.f32 %v168_v11, %v145_v12 }
  0x97   : > { %v176_v18 = vsel %vm174_vm0, %v171_v15, 0.0  ;;  %v180_v22 = vsel %vm174_vm0, %v173_v17, 0.0 }
  0x98   : > { %v177_v19 = vadd.f32 %v176_v18, %v175_v16 }
  0x9a   : > { %v179_v21 = vadd.f32 %v178_v20, %v177_v19 }
  0x9c   : > { %v181_v23 = vadd.f32 %v180_v22, %v179_v21 }
  0x9e   : > { %v182_v24 = vrot.slane %v181_v23, 4 }
  0xa0   : > { %v183_v25 = vadd.f32 %v182_v24, %v181_v23 }
  0xa2   : > { %v184_v26 = vrot.slane %v183_v25, 2 }
  0xa4   : > { %v185_v27 = vadd.f32 %v184_v26, %v183_v25 }
  0xa6   : > { %v186_v28 = vrot.slane %v185_v27, 1 }
  0xa8   : > { %v187_v29 = vadd.f32 %v186_v28, %v185_v27 }
  0xaa   : > { %v188_v30 = vsel %vm174_vm0, %v187_v29, -inf }
  0xab   : > { %189 = vmax.xlane.f32.xlu0 %v188_v30 }
 0x134   : > { %v190_v31 = vpop.xlane.xlu0 %189 }
 0x135   : > { %v191_v32 = vsub.f32 %v187_v29, %v190_v31 }
 0x137   : > { %v192_v33 = vmul.f32 1.442695, %v191_v32 }
 0x139   : > { %327 = vpow2.f32 %v192_v33 }
 0x146   : > { %v328_v34 = vpop.eup %327 }
 0x147   : > { %v194_v35 = vsel %vm174_vm0, %v328_v34, 0.0 }
 0x148   : > { %195 = vadd.xlane.f32.xlu1 %v194_v35 }
 0x1d1   : > { %v196_v36 = vpop.xlane.xlu1 %195 }
 0x1d2   : > { %329 = vrcp.f32 %v196_v36 }
 0x1df   : > { %v330_v37 = vpop.eup %329 }
 0x1e0   : > { %v198_v38 = vmul.f32 %v330_v37, %v328_v34 }
 0x1e2   : > { %199 = vst.msk [vmem:[%s136_s14] sm:$0xff] %vm174_vm0, %v198_v38 }
 0x1e3   : > { %344 = shalt.err (!%p341_p3)
}
 0x1e4   : > { %s345_s27 = scalar_lea.hbm %s212_s22, 128  ;;  %s349_s30 = scalar_lea.hbm %s518_s2, 256 }
 0x1e5   : > { %p346_p4 = scmp.ne.s32.totalorder %s212_s22, %s345_s27  ;;  %p350_p9 = scmp.lt.s32.totalorder %s212_s22, %s518_s2 }
 0x1e6   : > { %p351_p10 = scmp.lt.s32.totalorder %s349_s30, %s345_s27 }
 0x1e7   : > { %p347_p7 = pnand %p346_p4, %p448_p5 }
 0x1e8   : > { %p352_p11 = por %p351_p10, %p350_p9 }
 0x1e9   : > { %p348_p8 = pneg %p347_p7 }
 0x1eb   : > { %p353_p12 = pnand %p352_p11, %p348_p8 }
 0x1ed   : > { %356 = shalt.err (!%p353_p12)
}
 0x1ee   : > { %285 = dma.vmem_to_hbm [thread:$0]  (%p448_p5), %s215_s16, 128, %s212_s22, %s201_s23  }
 0x1ef PF: > { %p291_p13 = scmp.ge.s32.totalorder %s391_s12, 2  ;;  %s226_s5 = sand.u32 1, %s379_s9  }
 0x1f0   : > { %s227_s6 = scalar_lea.sflag [#allocation3], %s226_s5 }
 0x1f1   : > { %p288_p0 = pnand %p291_p13, %p452_p6 }
 0x1f3   : > { %p289_p1 = pneg %p288_p0 }
 0x1f5   : > { %374 = dma.done.wait (%p289_p1), %s227_s6, 128  }
 0x1f6   : > { %376 = vsyncadd (%p289_p1), %s227_s6, 4294967168  ;;  %p12_p2 = scmp.ge.s32.totalorder %s435_s15, 4   ;;  %s521_s9 = smov %s383_s10 }
 0x1f7   : > { %s522_s10 = smov %s387_s11  ;;  %s523_s11 = smov %s446_s18 }
 0x1f8   : > { %s524_s12 = smov %s435_s15  ;;  %14 = sbr.rel (!%p12_p2) target bundleno = 3 (0x3), region = 63 }
 0x1fd   :  { %232 = vsyncpa [#allocation3], 1 }
 0x1fe   :  { %234 = vsyncpa [#allocation3 + $0x1], 1 }

</bundles_post_ra>
